<compile_context>
chip_gen: v5e
topology: v5e:2x2
jax: 0.10.0
libtpu: 0.0.40
codegen_flags: <defaults>
</compile_context>

<pallas_src>
import functools

import jax
import jax.numpy as jnp
import numpy as np
from jax.experimental import pallas as pl
from jax.experimental.pallas import tpu as pltpu


def _cbam_kernel(x_ref, w1t_ref, w2t_ref, conv_avg_ref, conv_max_ref, out_ref,
                 *, c_chunk):
    # x_ref        : (Nb, C, HW)  VMEM block (lane-dense spatial axis)
    # w1t_ref      : (C, Cr)      fc[0] 1x1-conv weight, pre-transposed
    # w2t_ref      : (Cr, C)      fc[2] 1x1-conv weight, pre-transposed
    # conv_avg_ref : (HW, HW)     dense 7x7 conv matrix acting on the avg plane
    # conv_max_ref : (HW, HW)     dense 7x7 conv matrix acting on the max plane
    # out_ref      : (Nb, C, HW)
    Nb, C, HW = x_ref.shape
    f32 = jnp.float32

    # ---------------- Pass 1: channel-attention pools (reduce over HW) ------
    x = x_ref[...]
    avg_p = jnp.mean(x.astype(f32), axis=2)                 # (Nb, C)
    max_p = jnp.max(x, axis=2).astype(f32)                  # (Nb, C)

    # ---------------- channel MLP (shared weights, two tiny matmul chains) --
    w1t = w1t_ref[...].astype(f32)                          # (C, Cr)
    w2t = w2t_ref[...].astype(f32)                          # (Cr, C)

    def mlp(p):
        h = jnp.maximum(jnp.dot(p, w1t, preferred_element_type=f32), 0.0)
        return jnp.dot(h, w2t, preferred_element_type=f32)

    ca = jax.nn.sigmoid(mlp(avg_p) + mlp(max_p))            # (Nb, C)

    # ---------------- Pass 2 (fused): x_ca -> out_ref + channel stats -------
    # Chunked over C so we never hold a full live x_ca temporary.
    sum_c = jnp.zeros((Nb, HW), f32)
    max_c = jnp.full((Nb, HW), -jnp.inf, f32)
    n_chunks = C // c_chunk
    for i in range(n_chunks):                               # small static loop
        c0 = i * c_chunk
        xc = x_ref[:, c0:c0 + c_chunk, :].astype(f32)       # (Nb, cc, HW)
        gate = ca[:, c0:c0 + c_chunk][:, :, None]           # (Nb, cc, 1)
        xca = xc * gate
        out_ref[:, c0:c0 + c_chunk, :] = xca.astype(out_ref.dtype)
        sum_c = sum_c + jnp.sum(xca, axis=1)
        max_c = jnp.maximum(max_c, jnp.max(xca, axis=1))
    avg_c = sum_c * (1.0 / C)                               # (Nb, HW)

    # ---------------- spatial attention: 7x7 conv as one MXU matmul ---------
    logits = (jnp.dot(avg_c, conv_avg_ref[...], preferred_element_type=f32) +
              jnp.dot(max_c, conv_max_ref[...], preferred_element_type=f32))
    sa = jax.nn.sigmoid(logits)                             # (Nb, HW)

    # ---------------- Pass 3: out_ref *= sa ----------------------------------
    for i in range(n_chunks):
        c0 = i * c_chunk
        xca = out_ref[:, c0:c0 + c_chunk, :].astype(f32)
        out_ref[:, c0:c0 + c_chunk, :] = (xca * sa[:, None, :]).astype(
            out_ref.dtype)


def _spatial_conv_matrices(wsa_flat, H, W, K):
    """Dense (2, HW, HW) conv matrices for the 2->1 KxK conv with zero pad.

    conv_mat[c, p_in, p_out] = sum over taps (ky,kx) of w[c,ky,kx] where
    p_in = (yo+ky-P)*W + (xo+kx-P) is in-bounds for output pixel p_out=(yo,xo).
    Out-of-bounds taps simply have no matching input index -> zero padding.
    """
    P = K // 2
    ys = np.arange(H)
    xs = np.arange(W)
    ks = np.arange(K)
    # A_y[ky, yi, yo] = 1 iff yi == yo + ky - P   (shape (K, H, H))
    a_y = (ys[None, :, None] ==
           (ys[None, None, :] + ks[:, None, None] - P)).astype(np.float32)
    # A_x[kx, xi, xo] = 1 iff xi == xo + kx - P   (shape (K, W, W))
    a_x = (xs[None, :, None] ==
           (xs[None, None, :] + ks[:, None, None] - P)).astype(np.float32)
    w = wsa_flat.reshape(2, K, K).astype(jnp.float32)
    conv = jnp.einsum('ckl,kij,lpq->cipjq', w,
                      jnp.asarray(a_y), jnp.asarray(a_x))
    return conv.reshape(2, H * W, H * W)


def cbam_pallas(x, w1, w2, wsa_flat, kernel_size=7, batch_block=64):
    N, C, H, W = x.shape
    Cr = w1.shape[0]
    K = kernel_size
    HW = H * W
    itemsize = x.dtype.itemsize

    # Batch tile: as large as reasonable, but keep >= 2 grid steps so the
    # "parallel" batch axis can shard across v7x's two TensorCores.
    Nb = min(batch_block, N)
    if N >= 2:
        Nb = min(Nb, max(1, N // 2))
    while N % Nb:
        Nb -= 1

    # Channel-chunk size for the fused elementwise passes: keep chunks around
    # <= 1 MiB and the static loop short (<= 8 chunks).
    c_chunk = C
    min_chunk = max(1, C // 8)
    while c_chunk > min_chunk and Nb * c_chunk * HW * itemsize > (1 << 20):
        nxt = c_chunk // 2
        while C % nxt:
            nxt -= 1
        if nxt < min_chunk:
            break
        c_chunk = nxt

    # Lane-dense layout + pre-transposed 1x1-conv weights.
    x_flat = x.reshape(N, C, HW)
    w1t = jnp.transpose(w1)                                 # (C, Cr)
    w2t = jnp.transpose(w2)                                 # (Cr, C)

    # Dense conv matrices (spatial 7x7 conv -> one MXU matmul per plane).
    conv = _spatial_conv_matrices(wsa_flat, H, W, K)        # (2, HW, HW)
    conv_avg, conv_max = conv[0], conv[1]

    # VMEM budget: double-buffered in/out blocks + conv matrices + headroom.
    block_bytes = Nb * C * HW * itemsize
    conv_bytes = 2 * HW * HW * 4
    vmem_limit = int(min(
        max(4 * block_bytes + 2 * conv_bytes + (4 << 20), 16 << 20),
        120 << 20))

    kern = functools.partial(_cbam_kernel, c_chunk=c_chunk)
    out_flat = pl.pallas_call(
        kern,
        out_shape=jax.ShapeDtypeStruct((N, C, HW), x.dtype),
        grid_spec=pltpu.PrefetchScalarGridSpec(
            num_scalar_prefetch=0,
            grid=(N // Nb,),
            in_specs=[
                pl.BlockSpec((Nb, C, HW), lambda n: (n, 0, 0)),
                pl.BlockSpec((C, Cr), lambda n: (0, 0)),
                pl.BlockSpec((Cr, C), lambda n: (0, 0)),
                pl.BlockSpec((HW, HW), lambda n: (0, 0)),
                pl.BlockSpec((HW, HW), lambda n: (0, 0)),
            ],
            out_specs=pl.BlockSpec((Nb, C, HW), lambda n: (n, 0, 0)),
        ),
        compiler_params=pltpu.CompilerParams(
            dimension_semantics=("parallel",),   # batch tiles are independent
            vmem_limit_bytes=vmem_limit),
    )(x_flat, w1t, w2t, conv_avg, conv_max)
    return out_flat.reshape(N, C, H, W)


def cbam_ref(x, w1, w2, wsa_flat, kernel_size=7):
    """Pure-JAX reference matching the PyTorch module semantics."""
    K = kernel_size
    avg_p = jnp.mean(x, axis=(2, 3))                        # (N, C)
    max_p = jnp.max(x, axis=(2, 3))                         # (N, C)

    def fc(p):
        return jnp.maximum(p @ w1.T, 0.0) @ w2.T

    ca = jax.nn.sigmoid(fc(avg_p) + fc(max_p))[:, :, None, None]
    x_ca = x * ca
    avg_c = jnp.mean(x_ca, axis=1, keepdims=True)
    max_c = jnp.max(x_ca, axis=1, keepdims=True)
    inp = jnp.concatenate([avg_c, max_c], axis=1)           # (N, 2, H, W)
    wconv = wsa_flat.reshape(1, 2, K, K)
    conv = jax.lax.conv_general_dilated(
        inp, wconv, window_strides=(1, 1),
        padding=((K // 2, K // 2), (K // 2, K // 2)),
        dimension_numbers=("NCHW", "OIHW", "NCHW"))
    sa = jax.nn.sigmoid(conv)
    return x_ca * sa


if __name__ == "__main__":
    key = jax.random.PRNGKey(0)
    kx, k1, k2, k3 = jax.random.split(key, 4)

    # in_planes must be >= ratio for the PyTorch module to be well-formed
    N, C, H, W = 4, 32, 16, 16
    ratio, K = 16, 7
    Cr = C // ratio                                         # = 2

    x = jax.random.normal(kx, (N, C, H, W), jnp.float32)
    # deterministic synthetic weights (1x1 conv weights squeezed to 2D,
    # 7x7 spatial conv weight flattened [c, ky, kx])
    w1 = jax.random.normal(k1, (Cr, C), jnp.float32) * 0.2        # fc[0]
    w2 = jax.random.normal(k2, (C, Cr), jnp.float32) * 0.2        # fc[2]
    wsa = jax.random.normal(k3, (2 * K * K,), jnp.float32) * 0.1  # conv1

    out = cbam_pallas(x, w1, w2, wsa, kernel_size=K)
    out = jax.block_until_ready(out)

    ref = cbam_ref(x, w1, w2, wsa, kernel_size=K)
    assert out.shape == ref.shape and out.dtype == ref.dtype
    np.testing.assert_allclose(np.asarray(out), np.asarray(ref),
                               atol=1e-2, rtol=1e-2)
    print("KERNEL_OK")
</pallas_src>

<mosaic_0001>
module attributes {stable_mosaic.version = 11 : i64} {
  func.func @_cbam_kernel(%arg0: i32, %arg1: memref<2x32x256xf32, #tpu.memory_space<vmem>>, %arg2: memref<32x2xf32, #tpu.memory_space<vmem>>, %arg3: memref<2x32xf32, #tpu.memory_space<vmem>>, %arg4: memref<256x256xf32, #tpu.memory_space<vmem>>, %arg5: memref<256x256xf32, #tpu.memory_space<vmem>>, %arg6: memref<2x32x256xf32, #tpu.memory_space<vmem>>) attributes {dimension_semantics = [#tpu.dimension_semantics<parallel>], iteration_bounds = array<i64: 2>, scalar_prefetch = 0 : i64, scratch_operands = 0 : i64, tpu.core_type = #tpu.core_type<tc>, window_params = [{transform_indices = @transform_0, window_bounds = array<i64: 2, 32, 256>}, {pipeline_mode = #tpu.pipeline_mode<synchronous>, transform_indices = @transform_1, window_bounds = array<i64: 32, 2>}, {pipeline_mode = #tpu.pipeline_mode<synchronous>, transform_indices = @transform_2, window_bounds = array<i64: 2, 32>}, {pipeline_mode = #tpu.pipeline_mode<synchronous>, transform_indices = @transform_3, window_bounds = array<i64: 256, 256>}, {pipeline_mode = #tpu.pipeline_mode<synchronous>, transform_indices = @transform_4, window_bounds = array<i64: 256, 256>}, {transform_indices = @transform_5, window_bounds = array<i64: 2, 32, 256>}]} {
    %c0 = arith.constant 0 : index
    %c0_0 = arith.constant 0 : index
    %c0_1 = arith.constant 0 : index
    %0 = vector.load %arg1[%c0, %c0_0, %c0_1] : memref<2x32x256xf32, #tpu.memory_space<vmem>>, vector<2x32x256xf32>
    %cst = arith.constant dense<0.000000e+00> : vector<2x32xf32>
    %1 = vector.multi_reduction <add>, %0, %cst [2] : vector<2x32x256xf32> to vector<2x32xf32>
    %cst_2 = arith.constant 2.560000e+02 : f32
    %2 = vector.broadcast %cst_2 : f32 to vector<2x32xf32>
    %3 = arith.divf %1, %2 : vector<2x32xf32>
    %cst_3 = arith.constant dense<0xFF800000> : vector<2x32xf32>
    %4 = vector.multi_reduction <maximumf>, %0, %cst_3 [2] : vector<2x32x256xf32> to vector<2x32xf32>
    %c0_4 = arith.constant 0 : index
    %c0_5 = arith.constant 0 : index
    %5 = vector.load %arg2[%c0_4, %c0_5] : memref<32x2xf32, #tpu.memory_space<vmem>>, vector<32x2xf32>
    %c0_6 = arith.constant 0 : index
    %c0_7 = arith.constant 0 : index
    %6 = vector.load %arg3[%c0_6, %c0_7] : memref<2x32xf32, #tpu.memory_space<vmem>>, vector<2x32xf32>
    %cst_8 = arith.constant dense<0.000000e+00> : vector<2x2xf32>
    %7 = tpu.matmul %3, %5, %cst_8 {dimension_numbers = #tpu.dot_dimension_numbers<[1], [0], [0], [1], [0, 0, 1, 1], [], []>} : vector<2x32xf32>, vector<32x2xf32>, vector<2x2xf32> -> vector<2x2xf32>
    %cst_9 = arith.constant 0.000000e+00 : f32
    %8 = vector.broadcast %cst_9 : f32 to vector<2x2xf32>
    %9 = arith.maximumf %7, %8 : vector<2x2xf32>
    %cst_10 = arith.constant dense<0.000000e+00> : vector<2x32xf32>
    %10 = tpu.matmul %9, %6, %cst_10 {dimension_numbers = #tpu.dot_dimension_numbers<[1], [0], [0], [1], [0, 0, 1, 1], [], []>} : vector<2x2xf32>, vector<2x32xf32>, vector<2x32xf32> -> vector<2x32xf32>
    %cst_11 = arith.constant dense<0.000000e+00> : vector<2x2xf32>
    %11 = tpu.matmul %4, %5, %cst_11 {dimension_numbers = #tpu.dot_dimension_numbers<[1], [0], [0], [1], [0, 0, 1, 1], [], []>} : vector<2x32xf32>, vector<32x2xf32>, vector<2x2xf32> -> vector<2x2xf32>
    %cst_12 = arith.constant 0.000000e+00 : f32
    %12 = vector.broadcast %cst_12 : f32 to vector<2x2xf32>
    %13 = arith.maximumf %11, %12 : vector<2x2xf32>
    %cst_13 = arith.constant dense<0.000000e+00> : vector<2x32xf32>
    %14 = tpu.matmul %13, %6, %cst_13 {dimension_numbers = #tpu.dot_dimension_numbers<[1], [0], [0], [1], [0, 0, 1, 1], [], []>} : vector<2x2xf32>, vector<2x32xf32>, vector<2x32xf32> -> vector<2x32xf32>
    %15 = arith.addf %10, %14 : vector<2x32xf32>
    %16 = arith.negf %15 : vector<2x32xf32>
    %17 = math.exp %16 : vector<2x32xf32>
    %cst_14 = arith.constant 1.000000e+00 : f32
    %18 = vector.broadcast %cst_14 : f32 to vector<2x32xf32>
    %19 = arith.addf %18, %17 : vector<2x32xf32>
    %20 = arith.divf %18, %19 : vector<2x32xf32>
    %cst_15 = arith.constant 0.000000e+00 : f32
    %21 = vector.broadcast %cst_15 : f32 to vector<2x256xf32>
    %cst_16 = arith.constant 0xFF800000 : f32
    %22 = vector.broadcast %cst_16 : f32 to vector<2x256xf32>
    %c0_17 = arith.constant 0 : index
    %c0_18 = arith.constant 0 : index
    %c0_19 = arith.constant 0 : index
    %23 = vector.load %arg1[%c0_17, %c0_18, %c0_19] : memref<2x32x256xf32, #tpu.memory_space<vmem>>, vector<2x32x256xf32>
    %24 = vector.shape_cast %20 : vector<2x32xf32> to vector<2x32x1xf32>
    %25 = vector.broadcast %24 : vector<2x32x1xf32> to vector<2x32x256xf32>
    %26 = arith.mulf %23, %25 : vector<2x32x256xf32>
    %c0_20 = arith.constant 0 : index
    %c0_21 = arith.constant 0 : index
    %c0_22 = arith.constant 0 : index
    %27 = vector.load %arg6[%c0_20, %c0_21, %c0_22] : memref<2x32x256xf32, #tpu.memory_space<vmem>>, vector<2x32x256xf32>
    tpu.vector_store %arg6[%c0_20, %c0_21, %c0_22], %26 {strides = array<i32>} : memref<2x32x256xf32, #tpu.memory_space<vmem>>, vector<2x32x256xf32>,
    %cst_23 = arith.constant dense<0.000000e+00> : vector<2x256xf32>
    %28 = vector.multi_reduction <add>, %26, %cst_23 [1] : vector<2x32x256xf32> to vector<2x256xf32>
    %29 = arith.addf %21, %28 : vector<2x256xf32>
    %cst_24 = arith.constant dense<0xFF800000> : vector<2x256xf32>
    %30 = vector.multi_reduction <maximumf>, %26, %cst_24 [1] : vector<2x32x256xf32> to vector<2x256xf32>
    %31 = arith.maximumf %22, %30 : vector<2x256xf32>
    %cst_25 = arith.constant 3.125000e-02 : f32
    %32 = vector.broadcast %cst_25 : f32 to vector<2x256xf32>
    %33 = arith.mulf %29, %32 : vector<2x256xf32>
    %c0_26 = arith.constant 0 : index
    %c0_27 = arith.constant 0 : index
    %34 = vector.load %arg4[%c0_26, %c0_27] : memref<256x256xf32, #tpu.memory_space<vmem>>, vector<256x256xf32>
    %cst_28 = arith.constant dense<0.000000e+00> : vector<2x256xf32>
    %35 = tpu.matmul %33, %34, %cst_28 {dimension_numbers = #tpu.dot_dimension_numbers<[1], [0], [0], [1], [0, 0, 1, 1], [], []>} : vector<2x256xf32>, vector<256x256xf32>, vector<2x256xf32> -> vector<2x256xf32>
    %c0_29 = arith.constant 0 : index
    %c0_30 = arith.constant 0 : index
    %36 = vector.load %arg5[%c0_29, %c0_30] : memref<256x256xf32, #tpu.memory_space<vmem>>, vector<256x256xf32>
    %cst_31 = arith.constant dense<0.000000e+00> : vector<2x256xf32>
    %37 = tpu.matmul %31, %36, %cst_31 {dimension_numbers = #tpu.dot_dimension_numbers<[1], [0], [0], [1], [0, 0, 1, 1], [], []>} : vector<2x256xf32>, vector<256x256xf32>, vector<2x256xf32> -> vector<2x256xf32>
    %38 = arith.addf %35, %37 : vector<2x256xf32>
    %39 = arith.negf %38 : vector<2x256xf32>
    %40 = math.exp %39 : vector<2x256xf32>
    %cst_32 = arith.constant 1.000000e+00 : f32
    %41 = vector.broadcast %cst_32 : f32 to vector<2x256xf32>
    %42 = arith.addf %41, %40 : vector<2x256xf32>
    %43 = arith.divf %41, %42 : vector<2x256xf32>
    %c0_33 = arith.constant 0 : index
    %c0_34 = arith.constant 0 : index
    %c0_35 = arith.constant 0 : index
    %44 = vector.load %arg6[%c0_33, %c0_34, %c0_35] : memref<2x32x256xf32, #tpu.memory_space<vmem>>, vector<2x32x256xf32>
    %45 = vector.shape_cast %43 : vector<2x256xf32> to vector<2x1x256xf32>
    %46 = vector.broadcast %45 : vector<2x1x256xf32> to vector<2x32x256xf32>
    %47 = arith.mulf %44, %46 : vector<2x32x256xf32>
    %c0_36 = arith.constant 0 : index
    %c0_37 = arith.constant 0 : index
    %c0_38 = arith.constant 0 : index
    %48 = vector.load %arg6[%c0_36, %c0_37, %c0_38] : memref<2x32x256xf32, #tpu.memory_space<vmem>>, vector<2x32x256xf32>
    tpu.vector_store %arg6[%c0_36, %c0_37, %c0_38], %47 {strides = array<i32>} : memref<2x32x256xf32, #tpu.memory_space<vmem>>, vector<2x32x256xf32>,
    return
  }
  func.func @transform_0(%arg0: i32) -> (i32, i32, i32) {
    %c0_i32 = arith.constant 0 : i32
    %c0_i32_0 = arith.constant 0 : i32
    %c0_i32_1 = arith.constant 0 : i32
    return %arg0, %c0_i32, %c0_i32_0 : i32, i32, i32
  }
  func.func @transform_1(%arg0: i32) -> (i32, i32) {
    %c0_i32 = arith.constant 0 : i32
    %c0_i32_0 = arith.constant 0 : i32
    %c0_i32_1 = arith.constant 0 : i32
    return %c0_i32, %c0_i32_0 : i32, i32
  }
  func.func @transform_2(%arg0: i32) -> (i32, i32) {
    %c0_i32 = arith.constant 0 : i32
    %c0_i32_0 = arith.constant 0 : i32
    %c0_i32_1 = arith.constant 0 : i32
    return %c0_i32, %c0_i32_0 : i32, i32
  }
  func.func @transform_3(%arg0: i32) -> (i32, i32) {
    %c0_i32 = arith.constant 0 : i32
    %c0_i32_0 = arith.constant 0 : i32
    %c0_i32_1 = arith.constant 0 : i32
    return %c0_i32, %c0_i32_0 : i32, i32
  }
  func.func @transform_4(%arg0: i32) -> (i32, i32) {
    %c0_i32 = arith.constant 0 : i32
    %c0_i32_0 = arith.constant 0 : i32
    %c0_i32_1 = arith.constant 0 : i32
    return %c0_i32, %c0_i32_0 : i32, i32
  }
  func.func @transform_5(%arg0: i32) -> (i32, i32, i32) {
    %c0_i32 = arith.constant 0 : i32
    %c0_i32_0 = arith.constant 0 : i32
    %c0_i32_1 = arith.constant 0 : i32
    return %arg0, %c0_i32, %c0_i32_0 : i32, i32, i32
  }
}

</mosaic_0001>

<bundles_post_ra>
// kernel: tpu_custom_call.1
= control target key start
LH: loop header
LB: loop body
LE: loop exit
PB: predicated region body
PF: predicated region fallthrough
CT: control target
= control target key end

     0   :  { %10 = vsyncpa [#allocation3], 0  ;;  %s1932_s0 = inlined_call_operand.hbm [shape: f32[4,32,256], index: 0, kind: input, shape index: {}]   ;;  %s1933_s1 = inlined_call_operand.vmem [shape: f32[32,2], index: 1, kind: input, shape index: {}]   ;;  %s1934_s2 = inlined_call_operand.vmem [shape: f32[2,32], index: 2, kind: input, shape index: {}]   ;;  %s1935_s3 = inlined_call_operand.hbm [shape: f32[256,256], index: 3, kind: input, shape index: {}]   ;;  %s1936_s4 = inlined_call_operand.hbm [shape: f32[256,256], index: 4, kind: input, shape index: {}]   ;;  %s1937_s5 = inlined_call_operand.hbm [shape: f32[4,32,256], index: 5, kind: output, shape index: {}]  }
   0x1   :  { %12 = vsyncpa [#allocation3 + $0x1], 0 }
   0x2   :  { %13 = vsyncpa [#allocation6], 0 }
   0x3   :  { %14 = vsyncpa [#allocation4], 0 }
   0x4   :  { %16 = vsyncpa [#allocation4 + $0x1], 0  ;;  %s1539_s18 = smov 0   ;;  %s1541_s19 = smov 0  }
   0x5   :  { %s1543_s20 = smov 0   ;;  %s1545_s21 = smov 0  }
   0x6 LB: > { %s1560_s22 = sadd.s32 4294967295, %s1500_s21   ;;  %s1213_s23 = sadd.s32 4294967294, %s1500_s21   ;;  %s1500_s21 = sphi %s1545_s21, %s1949_s21   ;;  %s1496_s20 = sphi %s1543_s20, %s1948_s20   ;;  %s1492_s19 = sphi %s1541_s19, %s1947_s19   ;;  %s1488_s18 = sphi %s1539_s18, %s1946_s18  }
   0x7   : > { %p42_p0 = scmp.ne.s32.totalorder %s1492_s19, %s1488_s18  ;;  %p43_p1 = scmp.eq.s32.totalorder %s1560_s22, 0 }
   0x8   : > { %p150_p2 = scmp.eq.s32.totalorder %s1560_s22, 1  ;;  %p156_p3 = scmp.eq.s32.totalorder %s1213_s23, 1 }
   0x9   : > { %p1569_p4 = por %p43_p1, %p42_p0  ;;  %p1214_p5 = scmp.ge.s32.totalorder %s1500_s21, 1 }
   0xa   : > { %p1574_p6 = por %p156_p3, %p42_p0  ;;  %p163_p7 = scmp.lt.s32.totalorder %s1500_s21, 3 }
   0xb   : > { %s180_s28 = sshll.u32 %s1935_s3, 4  ;;  %s1502_s30 = smov [#allocation5]   ;;  %s181_s28 = int_to_ptr.hbm [resolvable:$true] %s180_s28 }
   0xc   : > { %p1582_p8 = pnand %p1214_p5, %p163_p7  ;;  %s182_s6 = sshll.u32 %s1502_s30, 4  ;;  %s183_s6 = int_to_ptr.vmem [resolvable:$true] %s182_s6 }
   0xd   : > { %s194_s9 = sshll.u32 %s1936_s4, 4  ;;  %s1938_s10 = smov 256   ;;  %s195_s9 = int_to_ptr.hbm [resolvable:$true] %s194_s9 }
   0xe   : > { %p1258_p9 = pneg %p1582_p8  ;;  %s1504_s11 = smov 16  }
   0xf   : > { %s1505_s12 = smov [#allocation7]   ;;  %s1601_s14 = sadd.s32 1, %s1500_s21  }
  0x10   : > { %p1259_p10 = pnand %p1258_p9, %p43_p1  ;;  %s196_s13 = sshll.u32 %s1505_s12, 4  ;;  %s197_s13 = int_to_ptr.vmem [resolvable:$true] %s196_s13 }
  0x11   : > { %s29_s15 = sadd.s32 1, %s1496_s20  ;;  %s26_s16 = ssub.s32 %s1500_s21, %s1601_s14 }
  0x12   : > { %1261 = dma.hbm_to_vmem [thread:$0]  (!%p1259_p10), %s181_s28, 8192, %s183_s6, [#allocation6], %s1938_s10, %s1938_s10, %s1504_s11  }
  0x13   : > { %1264 = dma.hbm_to_vmem [thread:$0]  (!%p1259_p10), %s195_s9, 8192, %s197_s13, [#allocation6], %s1938_s10, %s1938_s10, %s1504_s11  }
  0x14   : > { %p36_p12 = scmp.ne.s32.totalorder %s1496_s20, %s1492_s19  ;;  %p27_p13 = scmp.eq.s32.totalorder %s26_s16, 0 }
  0x15   : > { %p37_p0 = scmp.eq.s32.totalorder %s1500_s21, 0  ;;  %p1275_p5 = scmp.lt.s32.totalorder %s1500_s21, 2 }
  0x16   : > { %p1611_p3 = por %p150_p2, %p36_p12  ;;  %s210_s26 = sand.u32 1, %s1496_s20  }
  0x17   : > { %s1617_s23 = scalar_select %p27_p13, %s1496_s20, %s29_s15  }
  0x18   : > { %p38_p7 = por %p37_p0, %p36_p12  ;;  %s1218_s27 = sshll.u32 %s210_s26, 7 }
  0x19   : > { %s1243_s28 = sshll.u32 %s1500_s21, 7  ;;  %s214_s8 = scalar_lea.vmem [#allocation2], %s1218_s27 }
  0x1a   : > { %s220_s7 = scalar_lea.hbm %s1932_s0, %s1243_s28  ;;  %s223_s9 = sshll.u32 %s214_s8, 4  ;;  %s224_s9 = int_to_ptr.vmem [resolvable:$true] %s223_s9 }
  0x1b   : > { %s221_s12 = sshll.u32 %s220_s7, 4  ;;  %p1624_p2 = pnand %p1275_p5, %p38_p7  ;;  %s222_s12 = int_to_ptr.hbm [resolvable:$true] %s221_s12 }
  0x1c   : > { %s211_s15 = scalar_lea.sflag [#allocation3], %s210_s26  ;;  %s1400_s16 = sshra.s32 %s222_s12, 4  ;;  %s1401_s16 = int_to_ptr.hbm [resolvable:$true] %s1400_s16 }
  0x1d   : > { %s1402_s10 = scalar_lea.hbm %s1401_s16, 128  ;;  %p1404_p10 = pneg %p1624_p2 }
  0x1e   : > { %p1403_p9 = scmp.ne.s32.totalorder %s1401_s16, %s1402_s10  ;;  %s1407_s30 = scalar_lea.hbm %s1932_s0, 256 }
  0x1f   : > { %p1408_p0 = scmp.lt.s32.totalorder %s1401_s16, %s1932_s0  ;;  %p1409_p5 = scmp.lt.s32.totalorder %s1407_s30, %s1402_s10 }
  0x20   : > { %p1405_p12 = pnand %p1404_p10, %p1403_p9 }
  0x21   : > { %p1410_p7 = por %p1409_p5, %p1408_p0 }
  0x22   : > { %p1406_p13 = pneg %p1405_p12 }
  0x24   : > { %p1411_p11 = pnand %p1410_p7, %p1406_p13 }
  0x26   : > { %1414 = shalt.err (!%p1411_p11)
}
  0x27   : > { %s1944_s26 = smov 256   ;;  %235 = sbr.rel (%p1582_p8) target bundleno = 864 (0x360), region = 40 }
  0x28   : > { %1268 = dma.hbm_to_vmem [thread:$0]  (!%p1624_p2), %s222_s12, 2048, %s224_s9, %s211_s15, %s1944_s26, %s1944_s26, %s1504_s11  }
  0x29   : > { %s1644_s8 = sand.u32 (!%p1582_p8), 1, %s1492_s19  }
  0x2a   : > { %s1223_s10 = sshll.u32 (!%p1582_p8), %s1644_s8, 7  ;;  %s238_s16 = scalar_lea.sflag (!%p1582_p8), [#allocation3], %s1644_s8 }
  0x2b   : > { %s1650_s28 = scalar_lea.vmem (!%p1582_p8), [#allocation2], %s1223_s10 }
  0x2c   : > { %1475 = dma.done.wait (%p1569_p4), %s238_s16, 2048  }
  0x2d   : > { %1477 = vsyncadd (%p1569_p4), %s238_s16, 4294965248 }
  0x2e   : > { %1479 = dma.done.wait (%p43_p1), [#allocation6], 16384  }
  0x2f   : > { %1481 = vsyncadd (%p43_p1), [#allocation6], 4294950912  ;;  %v1661_v0 = vld [vmem:[%s1650_s28 + $0x40] sm:$0xff]  ;;  %v1664_v1 = vld [vmem:[%s1650_s28 + $0x48] sm:$0xff]  ;;  %v1506_v33 = vmov 256.0   ;;  %v373_v44 = vlaneseq  ;;  %vm378_vm1 = vcmask 130112  }
  0x30   : > { %v1667_v2 = vld [vmem:[%s1650_s28] sm:$0xff]  ;;  %v309_v3 = vadd.f32 %v1664_v1, %v1661_v0  ;;  %v1672_v4 = vld [vmem:[%s1650_s28 + $0x8] sm:$0xff]  ;;  %v1685_v9 = vld [vmem:[%s1650_s28 + $0x50] sm:$0xff]  ;;  %v348_v25 = vmax.f32 %v1661_v0, %v1664_v1  ;;  %1326 = vrcp.f32 %v1506_v33  ;;  %vm382_vm2 = vcmask 195712   ;;  %s1869_s7 = scalar_lea.vmem [#allocation8], %s1223_s10  ;;  %s1245_s26 = sshll.u32 %s1560_s22, 7 }
  0x31   : > { %v1675_v5 = vld [vmem:[%s1650_s28 + $0x20] sm:$0xff]  ;;  %v1678_v6 = vld [vmem:[%s1650_s28 + $0x28] sm:$0xff]  ;;  %v297_v7 = vadd.f32 %v1672_v4, %v1667_v2  ;;  %v1688_v10 = vld [vmem:[%s1650_s28 + $0x58] sm:$0xff]  ;;  %v336_v24 = vmax.f32 %v1667_v2, %v1672_v4  ;;  %v374_v46 = vand.u32 127, %v373_v44  ;;  %vm386_vm3 = vcmask 261312   ;;  %s1118_s22 = sshll.u32 %s1869_s7, 4  ;;  %s1119_s22 = int_to_ptr.vmem [resolvable:$true] %s1118_s22 }
  0x32   : > { %v303_v8 = vadd.f32 %v1678_v6, %v1675_v5  ;;  %310 = vadd.xlane.f32.xlu1 %v309_v3  ;;  %v1691_v11 = vld [vmem:[%s1650_s28 + $0x10] sm:$0xff]  ;;  %v1694_v12 = vld [vmem:[%s1650_s28 + $0x18] sm:$0xff]  ;;  %v1697_v13 = vld [vmem:[%s1650_s28 + $0x60] sm:$0xff]  ;;  %v312_v15 = vadd.f32 %v1688_v10, %v1685_v9  ;;  %v351_v27 = vmax.f32 %v1685_v9, %v1688_v10  ;;  %v342_v29 = vmax.f32 %v1675_v5, %v1678_v6  ;;  %s1105_s29 = scalar_lea.sflag [#allocation4], %s1644_s8  ;;  %s1450_s15 = scalar_lea.hbm %s1937_s5, 256 }
  0x33   : > { %298 = vadd.xlane.f32.xlu0 %v297_v7  ;;  %v1700_v14 = vld [vmem:[%s1650_s28 + $0x68] sm:$0xff]  ;;  %v300_v16 = vadd.f32 %v1694_v12, %v1691_v11  ;;  %v1709_v18 = vld [vmem:[%s1650_s28 + $0x70] sm:$0xff]  ;;  %v1712_v19 = vld [vmem:[%s1650_s28 + $0x78] sm:$0xff]  ;;  %v339_v26 = vmax.f32 %v1691_v11, %v1694_v12  ;;  %v376_v50 = vadd.s32 4294967288, %v374_v46  ;;  %v380_v56 = vadd.s32 4294967280, %v374_v46 }
  0x34   : > { %304 = vadd.xlane.f32.xlu2 %v303_v8  ;;  %v315_v17 = vadd.f32 %v1700_v14, %v1697_v13  ;;  %v1715_v20 = vld [vmem:[%s1650_s28 + $0x30] sm:$0xff]  ;;  %v1718_v21 = vld [vmem:[%s1650_s28 + $0x38] sm:$0xff]  ;;  %v318_v22 = vadd.f32 %v1712_v19, %v1709_v18  ;;  %v354_v28 = vmax.f32 %v1697_v13, %v1700_v14  ;;  %v357_v31 = vmax.f32 %v1709_v18, %v1712_v19  ;;  %v361_v35 = vld [vmem:[%s1933_s1 + $0x8] sm:$0xff]  ;;  %s1117_s28 = scalar_lea.hbm %s1937_s5, %s1245_s26 }
  0x35   : > { %v306_v23 = vadd.f32 %v1718_v21, %v1715_v20  ;;  %v345_v30 = vmax.f32 %v1715_v20, %v1718_v21  ;;  %v363_v32 = vld [vmem:[%s1933_s1 + $0x18] sm:$0xff]  ;;  %v362_v34 = vld [vmem:[%s1933_s1 + $0x10] sm:$0xff]  ;;  %v360_v36 = vld [vmem:[%s1933_s1] sm:$0xff]  ;;  %v384_v62 = vadd.s32 4294967272, %v374_v46  ;;  %vm395_vm4 = vcmask 1041409   ;;  %s1120_s24 = sshll.u32 %s1117_s28, 4  ;;  %s1121_s24 = int_to_ptr.hbm [resolvable:$true] %s1120_s24 }
  0x36   : > { %412 = vmatpush.msra.mxu0 %v363_v32  ;;  %458 = vmatpush.msra.mxu1 %v363_v32  ;;  %v1327_v37 = vpop.eup %1326  ;;  %vm397_vm5 = vcmask 261120   ;;  %vm471_vm6 = vcmask 1041408   ;;  %vm467_vm7 = vcmask 15360   ;;  %s1444_s11 = sshra.s32 %s1121_s24, 4  ;;  %s1445_s11 = int_to_ptr.hbm [resolvable:$true] %s1444_s11 }
  0x37   : > { %v322_v38 = vmul.f32 256.0, %v1327_v37  ;;  %vm326_vm0 = vweird.f32 %v1327_v37  ;;  %s1446_s9 = scalar_lea.hbm %s1445_s11, 128  ;;  %p1451_p11 = scmp.lt.s32.totalorder %s1445_s11, %s1937_s5 }
  0x38   : > { %413 = vmatpush.msra.mxu0 %v362_v34  ;;  %459 = vmatpush.msra.mxu1 %v362_v34  ;;  %p1447_p1 = scmp.ne.s32.totalorder %s1445_s11, %s1446_s9  ;;  %p1452_p2 = scmp.lt.s32.totalorder %s1450_s15, %s1446_s9 }
  0x39   : > { %v323_v39 = vsub.f32 1.0, %v322_v38 }
  0x3a   : > { %313 = vadd.xlane.f32.xlu1 %v312_v15  ;;  %414 = vmatpush.msra.mxu0 %v361_v35  ;;  %p1448_p4 = pnand %p1447_p1, %p1611_p3  ;;  %p1453_p9 = por %p1452_p2, %p1451_p11 }
  0x3b   : > { %301 = vadd.xlane.f32.xlu0 %v300_v16  ;;  %460 = vmatpush.msra.mxu1 %v361_v35  ;;  %v324_v40 = vmul.f32 %v1327_v37, %v323_v39 }
  0x3c   : > { %316 = vadd.xlane.f32.xlu2 %v315_v17  ;;  %415 = vmatpush.msra.mxu0 %v360_v36  ;;  %p1449_p8 = pneg %p1448_p4 }
  0x3d   : > { %461 = vmatpush.msra.mxu1 %v360_v36  ;;  %v325_v45 = vadd.f32 %v1327_v37, %v324_v40 }
  0x3e   : > { %p1454_p10 = pnand %p1453_p9, %p1449_p8 }
  0x3f   : > { %v327_v47 = vsel %vm326_vm0, %v1327_v37, %v325_v45 }
  0x42   : > { %319 = vadd.xlane.f32.xlu1 %v318_v22 }
  0x43   : > { %307 = vadd.xlane.f32.xlu0 %v306_v23 }
  0x44   : > { %337 = vmax.xlane.f32.xlu2 %v336_v24 }
  0x4a   : > { %349 = vmax.xlane.f32.xlu1 %v348_v25 }
  0x4b   : > { %340 = vmax.xlane.f32.xlu0 %v339_v26 }
  0x4c   : > { %352 = vmax.xlane.f32.xlu2 %v351_v27 }
  0x52   : > { %355 = vmax.xlane.f32.xlu1 %v354_v28 }
  0x53   : > { %343 = vmax.xlane.f32.xlu0 %v342_v29 }
  0x54   : > { %346 = vmax.xlane.f32.xlu2 %v345_v30 }
  0x5b   : > { %358 = vmax.xlane.f32.xlu0 %v357_v31 }
  0xa5   : > { %v311_v41 = vpop.xlane.xlu1 %310 }
  0xa6   : > { %v299_v42 = vpop.xlane.xlu0 %298  ;;  %v332_v49 = vmul.f32 %v327_v47, %v311_v41 }
  0xa7   : > { %v305_v43 = vpop.xlane.xlu2 %304  ;;  %v328_v55 = vmul.f32 %v327_v47, %v299_v42 }
  0xa8   : > { %v388_v58 = vperm.slane %v332_v49, %v374_v46  ;;  %v330_v59 = vmul.f32 %v327_v47, %v305_v43 }
  0xa9   : > { %v375_v63 = vperm.slane %v328_v55, %v374_v46  ;;  %v364_v55 = vld [vmem:[%s1934_s2] sm:$0x3] }
  0xaa   : > { %v381_v8 = vperm.slane %v330_v59, %v380_v56  ;;  %1231 = vmatpush.msk.msra.mxu3 %vm471_vm6, %v364_v55  ;;  %1229 = vmatpush.msk.msra.mxu2 %vm471_vm6, %v364_v55  ;;  %v815_v55 = vld [vmem:[#allocation7 + $0x1a0] sm:$0xff] }
  0xad   : > { %v314_v48 = vpop.xlane.xlu1 %313 }
  0xae   : > { %v333_v51 = vmul.f32 %v327_v47, %v314_v48  ;;  %v302_v52 = vpop.xlane.xlu0 %301 }
  0xaf   : > { %v317_v53 = vpop.xlane.xlu2 %316  ;;  %v329_v54 = vmul.f32 %v327_v47, %v302_v52 }
  0xb0   : > { %v334_v57 = vmul.f32 %v327_v47, %v317_v53  ;;  %v389_v60 = vperm.slane %v333_v51, %v376_v50 }
  0xb1   : > { %v377_v61 = vperm.slane %v329_v54, %v376_v50 }
  0xb2   : > { %v391_v3 = vperm.slane %v334_v57, %v380_v56  ;;  %v390_v15 = vsel %vm378_vm1, %v389_v60, %v388_v58  ;;  %v539_v60 = vshrl.u32 %v373_v44, 7 }
  0xb3   : > { %v379_v23 = vsel %vm378_vm1, %v377_v61, %v375_v63 }
  0xb4   : > { %v392_v27 = vsel %vm382_vm2, %v391_v3, %v390_v15  ;;  %v383_v28 = vsel %vm382_vm2, %v381_v8, %v379_v23  ;;  %1320 = vset.pattern.permute.xlu0 %v539_v60  ;;  %1318 = vset.pattern.permute.xlu1 %v539_v60  ;;  %v546_v61 = vadd.s32 8, %v539_v60 }
  0xb5   : > { %v320_v7 = vpop.xlane.xlu1 %319 }
  0xb6   : > { %v335_v16 = vmul.f32 %v327_v47, %v320_v7  ;;  %v308_v17 = vpop.xlane.xlu0 %307  ;;  %1319 = vset.pattern.permute.xlu2 %v546_v61  ;;  %v814_v61 = vld [vmem:[#allocation7 + $0x198] sm:$0xff] }
  0xb7   : > { %v338_v22 = vpop.xlane.xlu2 %337  ;;  %v331_v24 = vmul.f32 %v327_v47, %v308_v17 }
  0xb8   : > { %v393_v25 = vperm.slane %v335_v16, %v384_v62  ;;  %v429_v36 = vperm.slane %v338_v22, %v374_v46 }
  0xb9   : > { %v385_v26 = vperm.slane %v331_v24, %v384_v62 }
  0xba   : > { %v394_v29 = vsel %vm386_vm3, %v393_v25, %v392_v27 }
  0xbb   : > { %v387_v30 = vsel %vm386_vm3, %v385_v26, %v383_v28 }
  0xbc   : > { %v396_v31 = vsel %vm395_vm4, %v394_v29, %v387_v30 }
  0xbd   : > { %1227 = vmatmul.msk.f32.vlgmr.msra.gmra.mxu0 %vm397_vm5, %v396_v31  ;;  %v350_v33 = vpop.xlane.xlu1 %349  ;;  %v552_v31 = vadd.s32 16, %v539_v60 }
  0xbe   : > { %v341_v32 = vpop.xlane.xlu0 %340  ;;  %v436_v37 = vperm.slane %v350_v33, %v374_v46  ;;  %v793_v33 = vld [vmem:[#allocation7 + $0xf0] sm:$0xff] }
  0xbf   : > { %v353_v34 = vpop.xlane.xlu2 %352  ;;  %v430_v38 = vperm.slane %v341_v32, %v376_v50  ;;  %v558_v32 = vadd.s32 24, %v539_v60  ;;  %835 = vmatpush.msrb.mxu2 %v793_v33  ;;  %v782_v60 = vld [vmem:[#allocation7 + $0x98] sm:$0xff]  ;;  %v769_v33 = vld [vmem:[#allocation7 + $0x30] sm:$0xff] }
  0xc0   : > { %v437_v39 = vperm.slane %v353_v34, %v376_v50  ;;  %v825_v34 = vld [vmem:[#allocation7 + $0x1f0] sm:$0xff] }
  0xc1   : > { %v431_v45 = vsel %vm378_vm1, %v430_v38, %v429_v36  ;;  %855 = vmatpush.msrb.mxu3 %v825_v34  ;;  %v826_v36 = vld [vmem:[#allocation7 + $0x1f8] sm:$0xff]  ;;  %v823_v38 = vld [vmem:[#allocation7 + $0x1e0] sm:$0xff]  ;;  %v801_v34 = vld [vmem:[#allocation7 + $0x130] sm:$0xff] }
  0xc2   : > { %v438_v47 = vsel %vm378_vm1, %v437_v39, %v436_v37  ;;  %v791_v37 = vld [vmem:[#allocation7 + $0xe0] sm:$0xff]  ;;  %895 = vmatpush.msrb.mxu1 %v826_v36  ;;  %v792_v39 = vld [vmem:[#allocation7 + $0xe8] sm:$0xff]  ;;  %v802_v36 = vld [vmem:[#allocation7 + $0x138] sm:$0xff] }
  0xc3   : > { %836 = vmatpush.msrb.mxu2 %v791_v37  ;;  %856 = vmatpush.msrb.mxu3 %v823_v38  ;;  %v767_v38 = vld [vmem:[#allocation7 + $0x20] sm:$0xff] }
  0xc5   : > { %v356_v40 = vpop.xlane.xlu1 %355 }
  0xc6   : > { %v344_v35 = vpop.xlane.xlu0 %343  ;;  %v439_v43 = vperm.slane %v356_v40, %v380_v56  ;;  %v824_v40 = vld [vmem:[#allocation7 + $0x1e8] sm:$0xff] }
  0xc7   : > { %v432_v41 = vperm.slane %v344_v35, %v380_v56  ;;  %v347_v42 = vpop.xlane.xlu2 %346  ;;  %v794_v35 = vld [vmem:[#allocation7 + $0xf8] sm:$0xff]  ;;  %896 = vmatpush.msrb.mxu1 %v824_v40  ;;  %v768_v40 = vld [vmem:[#allocation7 + $0x28] sm:$0xff] }
  0xc8   : > { %v434_v48 = vperm.slane %v347_v42, %v384_v62  ;;  %v440_v53 = vsel %vm382_vm2, %v439_v43, %v438_v47  ;;  %875 = vmatpush.msrb.mxu0 %v794_v35  ;;  %v821_v42 = vld [vmem:[#allocation7 + $0x1d0] sm:$0xff]  ;;  %v790_v43 = vld [vmem:[#allocation7 + $0xd8] sm:$0xff]  ;;  %v787_v47 = vld [vmem:[#allocation7 + $0xc0] sm:$0xff] }
  0xc9   : > { %v433_v49 = vsel %vm382_vm2, %v432_v41, %v431_v45  ;;  %v789_v41 = vld [vmem:[#allocation7 + $0xd0] sm:$0xff]  ;;  %v822_v45 = vld [vmem:[#allocation7 + $0x1d8] sm:$0xff]  ;;  %857 = vmatpush.msrb.mxu3 %v821_v42 }
  0xca   : > { %v435_v54 = vsel %vm386_vm3, %v434_v48, %v433_v49  ;;  %876 = vmatpush.msrb.mxu0 %v792_v39  ;;  %837 = vmatpush.msrb.mxu2 %v789_v41  ;;  %v819_v48 = vld [vmem:[#allocation7 + $0x1c0] sm:$0xff]  ;;  %v788_v49 = vld [vmem:[#allocation7 + $0xc8] sm:$0xff]  ;;  %v770_v35 = vld [vmem:[#allocation7 + $0x38] sm:$0xff] }
  0xcb   : > { %897 = vmatpush.msrb.mxu1 %v822_v45  ;;  %858 = vmatpush.msrb.mxu3 %v819_v48  ;;  %v799_v39 = vld [vmem:[#allocation7 + $0x120] sm:$0xff]  ;;  %v800_v41 = vld [vmem:[#allocation7 + $0x128] sm:$0xff]  ;;  %v765_v42 = vld [vmem:[#allocation7 + $0x10] sm:$0xff] }
  0xcc   : > { %877 = vmatpush.msrb.mxu0 %v790_v43  ;;  %838 = vmatpush.msrb.mxu2 %v787_v47  ;;  %v797_v43 = vld [vmem:[#allocation7 + $0x110] sm:$0xff]  ;;  %v766_v45 = vld [vmem:[#allocation7 + $0x18] sm:$0xff]  ;;  %v763_v48 = vld [vmem:[#allocation7] sm:$0xff] }
  0xcd   : > { %v798_v47 = vld [vmem:[#allocation7 + $0x118] sm:$0xff] }
  0xce   : > { %v359_v51 = vpop.xlane.xlu0 %358  ;;  %878 = vmatpush.msrb.mxu0 %v788_v49  ;;  %v795_v49 = vld [vmem:[#allocation7 + $0x100] sm:$0xff] }
  0xcf   : > { %v441_v52 = vperm.slane %v359_v51, %v384_v62  ;;  %v820_v51 = vld [vmem:[#allocation7 + $0x1c8] sm:$0xff] }
  0xd0   : > { %898 = vmatpush.msrb.mxu1 %v820_v51  ;;  %v764_v51 = vld [vmem:[#allocation7 + $0x8] sm:$0xff] }
  0xd1   : > { %v442_v46 = vsel %vm386_vm3, %v441_v52, %v440_v53  ;;  %v785_v52 = vld [vmem:[#allocation7 + $0xb0] sm:$0xff]  ;;  %vm1060_vm3 = vcmask 1040384  }
  0xd2   : > { %v443_v50 = vsel %vm395_vm4, %v442_v46, %v435_v54  ;;  %v817_v53 = vld [vmem:[#allocation7 + $0x1b0] sm:$0xff]  ;;  %v786_v54 = vld [vmem:[#allocation7 + $0xb8] sm:$0xff]  ;;  %839 = vmatpush.msrb.mxu2 %v785_v52  ;;  %v796_v52 = vld [vmem:[#allocation7 + $0x108] sm:$0xff] }
  0xd3   : > { %1228 = vmatmul.msk.f32.vlgmr.msra.gmra.mxu1 %vm397_vm5, %v443_v50  ;;  %859 = vmatpush.msrb.mxu3 %v817_v53  ;;  %v818_v46 = vld [vmem:[#allocation7 + $0x1b8] sm:$0xff]  ;;  %v783_v50 = vld [vmem:[#allocation7 + $0xa0] sm:$0xff]  ;;  %v729_v53 = vld [vmem:[#allocation5 + $0xf0] sm:$0xff] }
  0xd4   : > { %879 = vmatpush.msrb.mxu0 %v786_v54  ;;  %899 = vmatpush.msrb.mxu1 %v818_v46  ;;  %v761_v54 = vld [vmem:[#allocation5 + $0x1f0] sm:$0xff]  ;;  %v730_v46 = vld [vmem:[#allocation5 + $0xf8] sm:$0xff] }
  0xd5   : > { %840 = vmatpush.msrb.mxu2 %v783_v50  ;;  %860 = vmatpush.msrb.mxu3 %v815_v55  ;;  %v762_v50 = vld [vmem:[#allocation5 + $0x1f8] sm:$0xff]  ;;  %v727_v55 = vld [vmem:[#allocation5 + $0xe0] sm:$0xff] }
 0x13a   : > { %v417_v56 = vpop.f32.mrf.mxu0 }
 0x13b   : > { %v420_v57 = vmax.f32 %v417_v56, 0.0  ;;  %v784_v56 = vld [vmem:[#allocation7 + $0xa8] sm:$0xff] }
 0x13c   : > { %880 = vmatpush.msrb.mxu0 %v784_v56  ;;  %v759_v56 = vld [vmem:[#allocation5 + $0x1e0] sm:$0xff] }
 0x13d   : > { %1232 = vmatmul.msk.f32.vlgmr.msra.gmra.mxu3 %vm467_vm7, %v420_v57  ;;  %v816_v57 = vld [vmem:[#allocation7 + $0x1a8] sm:$0xff] }
 0x13e   : > { %900 = vmatpush.msrb.mxu1 %v816_v57  ;;  %881 = vmatpush.msrb.mxu0 %v782_v60  ;;  %v728_v57 = vld [vmem:[#allocation5 + $0xe8] sm:$0xff]  ;;  %v757_v60 = vld [vmem:[#allocation5 + $0x1d0] sm:$0xff] }
 0x140   : > { %901 = vmatpush.msrb.mxu1 %v814_v61  ;;  %v726_v61 = vld [vmem:[#allocation5 + $0xd8] sm:$0xff] }
 0x150   : > { %v463_v58 = vpop.f32.mrf.mxu1 }
 0x151   : > { %v466_v59 = vmax.f32 %v463_v58, 0.0  ;;  %v781_v58 = vld [vmem:[#allocation7 + $0x90] sm:$0xff] }
 0x152   : > { %841 = vmatpush.msrb.mxu2 %v781_v58  ;;  %v760_v58 = vld [vmem:[#allocation5 + $0x1e8] sm:$0xff] }
 0x153   : > { %1230 = vmatmul.msk.f32.vlgmr.msra.gmra.mxu2 %vm467_vm7, %v466_v59  ;;  %v813_v59 = vld [vmem:[#allocation7 + $0x190] sm:$0xff] }
 0x154   : > { %861 = vmatpush.msrb.mxu3 %v813_v59  ;;  %v725_v59 = vld [vmem:[#allocation5 + $0xd0] sm:$0xff] }
 0x1c0   : > { %v515_v62 = vpop.f32.mrf.mxu3 }
 0x1d6   : > { %v492_v63 = vpop.f32.mrf.mxu2 }
 0x1d7   : > { %v516_v3 = vadd.f32 %v515_v62, %v492_v63  ;;  %v779_v62 = vld [vmem:[#allocation7 + $0x80] sm:$0xff] }
 0x1d8   : > { %v811_v63 = vld [vmem:[#allocation7 + $0x180] sm:$0xff]  ;;  %842 = vmatpush.msrb.mxu2 %v779_v62 }
 0x1d9   : > { %v1233_v7 = vmul.f32 -1.442695, %v516_v3  ;;  %v780_v3 = vld [vmem:[#allocation7 + $0x88] sm:$0xff]  ;;  %862 = vmatpush.msrb.mxu3 %v811_v63  ;;  %v758_v63 = vld [vmem:[#allocation5 + $0x1d8] sm:$0xff] }
 0x1da   : > { %882 = vmatpush.msrb.mxu0 %v780_v3  ;;  %v723_v3 = vld [vmem:[#allocation5 + $0xc0] sm:$0xff] }
 0x1db   : > { %1328 = vpow2.f32 %v1233_v7  ;;  %v812_v7 = vld [vmem:[#allocation7 + $0x188] sm:$0xff] }
 0x1dc   : > { %902 = vmatpush.msrb.mxu1 %v812_v7  ;;  %v755_v7 = vld [vmem:[#allocation5 + $0x1c0] sm:$0xff] }
 0x1e1   : > { %v1329_v8 = vpop.eup %1328 }
 0x1e2   : > { %v521_v15 = vadd.f32 1.0, %v1329_v8  ;;  %v777_v8 = vld [vmem:[#allocation7 + $0x70] sm:$0xff] }
 0x1e3   : > { %843 = vmatpush.msrb.mxu2 %v777_v8  ;;  %v724_v8 = vld [vmem:[#allocation5 + $0xc8] sm:$0xff] }
 0x1e4   : > { %1330 = vrcp.f32 %v521_v15  ;;  %v533_v23 = vand.u32 2147483648, %v521_v15  ;;  %v531_v25 = vand.u32 2147483647, %v521_v15  ;;  %vm527_vm9 = vweird.f32 %v521_v15 }
 0x1e6   : > { %v534_v26 = vor.u32 1.1754944e-38, %v533_v23  ;;  %vm532_vm11 = vcmp.eq.f32.partialorder %v531_v25, 8.507059e+37  ;;  %v807_v23 = vld [vmem:[#allocation7 + $0x160] sm:$0xff]  ;;  %v808_v25 = vld [vmem:[#allocation7 + $0x168] sm:$0xff] }
 0x1ea   : > { %v1331_v16 = vpop.eup %1330 }
 0x1eb   : > { %v523_v17 = vmul.f32 %v1331_v16, %v521_v15  ;;  %vm528_vm8 = vweird.f32 %v1331_v16  ;;  %v809_v15 = vld [vmem:[#allocation7 + $0x170] sm:$0xff] }
 0x1ec   : > { %vm529_vm10 = vmor %vm527_vm9, %vm528_vm8  ;;  %863 = vmatpush.msrb.mxu3 %v809_v15  ;;  %v756_v15 = vld [vmem:[#allocation5 + $0x1c8] sm:$0xff] }
 0x1ed   : > { %v524_v22 = vsub.f32 1.0, %v523_v17  ;;  %v810_v17 = vld [vmem:[#allocation7 + $0x178] sm:$0xff] }
 0x1ee   : > { %903 = vmatpush.msrb.mxu1 %v810_v17  ;;  %864 = vmatpush.msrb.mxu3 %v807_v23  ;;  %v753_v17 = vld [vmem:[#allocation5 + $0x1b0] sm:$0xff]  ;;  %v754_v23 = vld [vmem:[#allocation5 + $0x1b8] sm:$0xff] }
 0x1ef   : > { %v525_v24 = vmul.f32 %v1331_v16, %v524_v22  ;;  %v775_v22 = vld [vmem:[#allocation7 + $0x60] sm:$0xff] }
 0x1f0   : > { %844 = vmatpush.msrb.mxu2 %v775_v22  ;;  %904 = vmatpush.msrb.mxu1 %v808_v25  ;;  %v722_v22 = vld [vmem:[#allocation5 + $0xb8] sm:$0xff]  ;;  %v751_v25 = vld [vmem:[#allocation5 + $0x1a0] sm:$0xff] }
 0x1f1   : > { %v526_v44 = vadd.f32 %v1331_v16, %v525_v24  ;;  %v776_v24 = vld [vmem:[#allocation7 + $0x68] sm:$0xff] }
 0x1f3   : > { %v530_v27 = vsel %vm529_vm10, %v1331_v16, %v526_v44  ;;  %v778_v16 = vld [vmem:[#allocation7 + $0x78] sm:$0xff]  ;;  %v773_v44 = vld [vmem:[#allocation7 + $0x50] sm:$0xff] }
 0x1f4   : > { %v535_v28 = vsel %vm532_vm11, %v534_v26, %v530_v27  ;;  %883 = vmatpush.msrb.mxu0 %v778_v16  ;;  %v805_v26 = vld [vmem:[#allocation7 + $0x150] sm:$0xff]  ;;  %v774_v27 = vld [vmem:[#allocation7 + $0x58] sm:$0xff]  ;;  %845 = vmatpush.msrb.mxu2 %v773_v44  ;;  %v720_v44 = vld [vmem:[#allocation5 + $0xa8] sm:$0xff] }
 0x1f5   : > { %v562_v29 = vperm.slane %v535_v28, 1  ;;  %v537_v30 = vperm.slane %v535_v28, 0  ;;  %v806_v28 = vld [vmem:[#allocation7 + $0x158] sm:$0xff]  ;;  %865 = vmatpush.msrb.mxu3 %v805_v26  ;;  %v721_v16 = vld [vmem:[#allocation5 + $0xb0] sm:$0xff]  ;;  %v752_v26 = vld [vmem:[#allocation5 + $0x1a8] sm:$0xff] }
 0x1f6   : > { %884 = vmatpush.msrb.mxu0 %v776_v24  ;;  %905 = vmatpush.msrb.mxu1 %v806_v28  ;;  %v719_v24 = vld [vmem:[#allocation5 + $0xa0] sm:$0xff]  ;;  %v717_v28 = vld [vmem:[#allocation5 + $0x90] sm:$0xff] }
 0x1f7   : > { %567 = vperm.xlu0 %1320, %v562_v29   ;;  %548 = vperm.xlu2 %1319, %v537_v30  }
 0x1f8   : > { %542 = vperm.xlu1 %1318, %v537_v30   ;;  %885 = vmatpush.msrb.mxu0 %v774_v27 }
 0x1ff   : > { %573 = vperm.xlu2 %1319, %v562_v29   ;;  %1325 = vset.pattern.permute.xlu0 %v558_v32 }
 0x200   : > { %1321 = vset.pattern.permute.xlu1 %v552_v31 }
 0x207   : > { %1322 = vset.pattern.permute.xlu2 %v552_v31  ;;  %v772_v31 = vld [vmem:[#allocation7 + $0x48] sm:$0xff] }
 0x208   : > { %554 = vperm.xlu1 %1321, %v537_v30   ;;  %886 = vmatpush.msrb.mxu0 %v772_v31  ;;  %v750_v31 = vld [vmem:[#allocation5 + $0x198] sm:$0xff] }
 0x20a   : > { %887 = vmatpush.msrb.mxu0 %v770_v35  ;;  %v716_v35 = vld [vmem:[#allocation5 + $0x88] sm:$0xff] }
 0x20c   : > { %888 = vmatpush.msrb.mxu0 %v768_v40 }
 0x20e   : > { %889 = vmatpush.msrb.mxu0 %v766_v45  ;;  %v711_v45 = vld [vmem:[#allocation5 + $0x60] sm:$0xff] }
 0x20f   : > { %579 = vperm.xlu2 %1322, %v562_v29  }
 0x210   : > { %1323 = vset.pattern.permute.xlu1 %v558_v32  ;;  %890 = vmatpush.msrb.mxu0 %v764_v51  ;;  %v744_v51 = vld [vmem:[#allocation5 + $0x168] sm:$0xff] }
 0x212   : > { %963 = vmatpush.msra.mxu0 %v730_v46 }
 0x214   : > { %964 = vmatpush.msra.mxu0 %v728_v57 }
 0x216   : > { %965 = vmatpush.msra.mxu0 %v726_v61 }
 0x217   : > { %1324 = vset.pattern.permute.xlu2 %v558_v32  ;;  %v804_v32 = vld [vmem:[#allocation7 + $0x148] sm:$0xff] }
 0x218   : > { %560 = vperm.xlu1 %1323, %v537_v30   ;;  %v803_v30 = vld [vmem:[#allocation7 + $0x140] sm:$0xff]  ;;  %906 = vmatpush.msrb.mxu1 %v804_v32 }
 0x219   : > { %866 = vmatpush.msrb.mxu3 %v803_v30  ;;  %966 = vmatpush.msra.mxu0 %v724_v8  ;;  %v718_v30 = vld [vmem:[#allocation5 + $0x98] sm:$0xff] }
 0x21a   : > { %907 = vmatpush.msrb.mxu1 %v802_v36  ;;  %v748_v36 = vld [vmem:[#allocation5 + $0x188] sm:$0xff] }
 0x21b   : > { %867 = vmatpush.msrb.mxu3 %v801_v34  ;;  %967 = vmatpush.msra.mxu0 %v722_v22  ;;  %v747_v34 = vld [vmem:[#allocation5 + $0x180] sm:$0xff] }
 0x21c   : > { %908 = vmatpush.msrb.mxu1 %v800_v41  ;;  %v735_v22 = vld [vmem:[#allocation5 + $0x120] sm:$0xff] }
 0x21d   : > { %868 = vmatpush.msrb.mxu3 %v799_v39  ;;  %968 = vmatpush.msra.mxu0 %v720_v44  ;;  %v745_v39 = vld [vmem:[#allocation5 + $0x170] sm:$0xff]  ;;  %v704_v44 = vld [vmem:[#allocation5 + $0x28] sm:$0xff] }
 0x21e   : > { %909 = vmatpush.msrb.mxu1 %v798_v47  ;;  %v743_v47 = vld [vmem:[#allocation5 + $0x160] sm:$0xff] }
 0x21f   : > { %585 = vperm.xlu2 %1324, %v562_v29   ;;  %v771_v29 = vld [vmem:[#allocation7 + $0x40] sm:$0xff]  ;;  %869 = vmatpush.msrb.mxu3 %v797_v43  ;;  %v746_v43 = vld [vmem:[#allocation5 + $0x178] sm:$0xff] }
 0x220   : > { %846 = vmatpush.msrb.mxu2 %v771_v29  ;;  %910 = vmatpush.msrb.mxu1 %v796_v52  ;;  %v749_v29 = vld [vmem:[#allocation5 + $0x190] sm:$0xff] }
 0x221   : > { %870 = vmatpush.msrb.mxu3 %v795_v49  ;;  %969 = vmatpush.msra.mxu0 %v718_v30  ;;  %v709_v52 = vld [vmem:[#allocation5 + $0x50] sm:$0xff] }
 0x222   : > { %847 = vmatpush.msrb.mxu2 %v769_v33  ;;  %983 = vmatpush.msra.mxu1 %v762_v50  ;;  %v715_v33 = vld [vmem:[#allocation5 + $0x80] sm:$0xff]  ;;  %v742_v50 = vld [vmem:[#allocation5 + $0x158] sm:$0xff]  ;;  %v733_v30 = vld [vmem:[#allocation5 + $0x110] sm:$0xff] }
 0x223   : > { %943 = vmatpush.msra.mxu3 %v761_v54  ;;  %970 = vmatpush.msra.mxu0 %v716_v35  ;;  %v702_v35 = vld [vmem:[#allocation5 + $0x18] sm:$0xff] }
 0x224   : > { %848 = vmatpush.msrb.mxu2 %v767_v38  ;;  %984 = vmatpush.msra.mxu1 %v760_v58  ;;  %v713_v38 = vld [vmem:[#allocation5 + $0x70] sm:$0xff] }
 0x225   : > { %944 = vmatpush.msra.mxu3 %v759_v56 }
 0x226   : > { %849 = vmatpush.msrb.mxu2 %v765_v42  ;;  %985 = vmatpush.msra.mxu1 %v758_v63  ;;  %v714_v42 = vld [vmem:[#allocation5 + $0x78] sm:$0xff] }
 0x227   : > { %945 = vmatpush.msra.mxu3 %v757_v60  ;;  %971 = vmatpush.msra.mxu0 %v714_v42  ;;  %v739_v60 = vld [vmem:[#allocation5 + $0x140] sm:$0xff] }
 0x228   : > { %850 = vmatpush.msrb.mxu2 %v763_v48  ;;  %986 = vmatpush.msra.mxu1 %v756_v15 }
 0x229   : > { %946 = vmatpush.msra.mxu3 %v755_v7  ;;  %v706_v7 = vld [vmem:[#allocation5 + $0x38] sm:$0xff] }
 0x22a   : > { %923 = vmatpush.msra.mxu2 %v729_v53  ;;  %987 = vmatpush.msra.mxu1 %v754_v23 }
 0x22b   : > { %947 = vmatpush.msra.mxu3 %v753_v17  ;;  %v703_v17 = vld [vmem:[#allocation5 + $0x20] sm:$0xff] }
 0x22c   : > { %924 = vmatpush.msra.mxu2 %v727_v55  ;;  %988 = vmatpush.msra.mxu1 %v752_v26  ;;  %v736_v26 = vld [vmem:[#allocation5 + $0x128] sm:$0xff] }
 0x22d   : > { %948 = vmatpush.msra.mxu3 %v751_v25 }
 0x22e   : > { %925 = vmatpush.msra.mxu2 %v725_v59  ;;  %989 = vmatpush.msra.mxu1 %v750_v31  ;;  %v707_v59 = vld [vmem:[#allocation5 + $0x40] sm:$0xff] }
 0x22f   : > { %949 = vmatpush.msra.mxu3 %v749_v29  ;;  %v701_v29 = vld [vmem:[#allocation5 + $0x10] sm:$0xff] }
 0x230   : > { %926 = vmatpush.msra.mxu2 %v723_v3  ;;  %990 = vmatpush.msra.mxu1 %v748_v36  ;;  %v737_v3 = vld [vmem:[#allocation5 + $0x130] sm:$0xff]  ;;  %v734_v36 = vld [vmem:[#allocation5 + $0x118] sm:$0xff] }
 0x231   : > { %950 = vmatpush.msra.mxu3 %v747_v34 }
 0x232   : > { %927 = vmatpush.msra.mxu2 %v721_v16  ;;  %991 = vmatpush.msra.mxu1 %v746_v43  ;;  %v738_v16 = vld [vmem:[#allocation5 + $0x138] sm:$0xff] }
 0x233   : > { %951 = vmatpush.msra.mxu3 %v745_v39  ;;  %v731_v39 = vld [vmem:[#allocation5 + $0x100] sm:$0xff] }
 0x234   : > { %928 = vmatpush.msra.mxu2 %v719_v24  ;;  %992 = vmatpush.msra.mxu1 %v744_v51 }
 0x235   : > { %952 = vmatpush.msra.mxu3 %v743_v47  ;;  %v732_v47 = vld [vmem:[#allocation5 + $0x108] sm:$0xff] }
 0x236   : > { %929 = vmatpush.msra.mxu2 %v717_v28  ;;  %993 = vmatpush.msra.mxu1 %v742_v50 }
 0x238   : > { %930 = vmatpush.msra.mxu2 %v715_v33 }
 0x23a   : > { %931 = vmatpush.msra.mxu2 %v713_v38  ;;  %v699_v38 = vld [vmem:[#allocation5] sm:$0xff] }
 0x23c   : > { %932 = vmatpush.msra.mxu2 %v711_v45  ;;  %v700_v45 = vld [vmem:[#allocation5 + $0x8] sm:$0xff] }
 0x23e   : > { %933 = vmatpush.msra.mxu2 %v709_v52 }
 0x240   : > { %934 = vmatpush.msra.mxu2 %v707_v59 }
 0x251   : > { %v1773_v37 = vpop.permute.xlu2 %548 }
 0x259   : > { %v574_v62 = vpop.permute.xlu2 %573 }
 0x25a   : > { %v1782_v48 = vmul.f32 %v574_v62, %v1685_v9  ;;  %v1785_v49 = vmul.f32 %v574_v62, %v1688_v10  ;;  %v741_v9 = vld [vmem:[#allocation5 + $0x150] sm:$0xff]  ;;  %v710_v10 = vld [vmem:[#allocation5 + $0x58] sm:$0xff]  ;;  %v708_v62 = vld [vmem:[#allocation5 + $0x48] sm:$0xff] }
 0x25b   : > { %953 = vmatpush.msra.mxu3 %v741_v9 }
 0x25d   : > { %954 = vmatpush.msra.mxu3 %v739_v60 }
 0x25f   : > { %955 = vmatpush.msra.mxu3 %v737_v3 }
 0x261   : > { %956 = vmatpush.msra.mxu3 %v735_v22 }
 0x263   : > { %957 = vmatpush.msra.mxu3 %v733_v30 }
 0x265   : > { %958 = vmatpush.msra.mxu3 %v731_v39 }
 0x269   : > { %v580_v27 = vpop.permute.xlu2 %579  ;;  %v568_v32 = vpop.permute.xlu0 %567 }
 0x26a   : > { %v1776_v40 = vmul.f32 %v568_v32, %v1661_v0  ;;  %v1779_v41 = vmul.f32 %v568_v32, %v1664_v1  ;;  %v712_v0 = vld [vmem:[#allocation5 + $0x68] sm:$0xff]  ;;  %v543_v46 = vpop.permute.xlu1 %542  ;;  %v1792_v55 = vmul.f32 %v580_v27, %v1697_v13  ;;  %v1795_v56 = vmul.f32 %v580_v27, %v1700_v14 }
 0x26b   : > { %972 = vmatpush.msra.mxu0 %v712_v0  ;;  %v1814_v27 = vmul.f32 %v543_v46, %v1667_v2  ;;  %v1817_v28 = vmul.f32 %v543_v46, %v1672_v4  ;;  %v1823_v2 = vmul.f32 %v1773_v37, %v1691_v11  ;;  %v1827_v4 = vmul.f32 %v1773_v37, %v1694_v12 }
 0x26c   : > { %v677_v53 = vmax.f32 %v1776_v40, %v1782_v48  ;;  %v686_v54 = vmax.f32 %v1779_v41, %v1785_v49  ;;  %v637_v61 = vadd.f32 %v1782_v48, %v1776_v40  ;;  %v646_v13 = vadd.f32 %v1785_v49, %v1779_v41 }
 0x26d   : > { %973 = vmatpush.msra.mxu0 %v710_v10  ;;  %v619_v11 = vadd.f32 %v1823_v2, %v1814_v27  ;;  %v628_v12 = vadd.f32 %v1827_v4, %v1817_v28 }
 0x26e   : > { %v678_v14 = vmax.f32 %v677_v53, %v1792_v55  ;;  %v687_v63 = vmax.f32 %v686_v54, %v1795_v56  ;;  %v638_v23 = vadd.f32 %v637_v61, %v1792_v55  ;;  %v647_v24 = vadd.f32 %v646_v13, %v1795_v56 }
 0x26f   : > { %974 = vmatpush.msra.mxu0 %v708_v62 }
 0x271   : > { %975 = vmatpush.msra.mxu0 %v706_v7 }
 0x273   : > { %976 = vmatpush.msra.mxu0 %v704_v44 }
 0x275   : > { %977 = vmatpush.msra.mxu0 %v702_v35 }
 0x277   : > { %978 = vmatpush.msra.mxu0 %v700_v45 }
 0x279   : > { %v586_v1 = vpop.permute.xlu2 %585 }
 0x27a   : > { %v1798_v57 = vmul.f32 %v586_v1, %v1709_v18  ;;  %v1801_v58 = vmul.f32 %v586_v1, %v1712_v19  ;;  %v740_v18 = vld [vmem:[#allocation5 + $0x148] sm:$0xff]  ;;  %v705_v19 = vld [vmem:[#allocation5 + $0x30] sm:$0xff]  ;;  %v555_v25 = vpop.permute.xlu1 %554  ;;  %v668_v1 = vmax.f32 %v1817_v28, %v1827_v4 }
 0x27b   : > { %994 = vmatpush.msra.mxu1 %v740_v18  ;;  %935 = vmatpush.msra.mxu2 %v705_v19  ;;  %v1830_v42 = vmul.f32 %v555_v25, %v1675_v5  ;;  %v1833_v43 = vmul.f32 %v555_v25, %v1678_v6  ;;  %v659_v6 = vmax.f32 %v1814_v27, %v1823_v2 }
 0x27c   : > { %v679_v8 = vmax.f32 %v678_v14, %v1798_v57  ;;  %v688_v15 = vmax.f32 %v687_v63, %v1801_v58  ;;  %v639_v31 = vadd.f32 %v638_v23, %v1798_v57  ;;  %v648_v32 = vadd.f32 %v647_v24, %v1801_v58 }
 0x27d   : > { %995 = vmatpush.msra.mxu1 %v738_v16  ;;  %936 = vmatpush.msra.mxu2 %v703_v17  ;;  %v620_v52 = vadd.f32 %v619_v11, %v1830_v42  ;;  %v629_v53 = vadd.f32 %v628_v12, %v1833_v43  ;;  %v660_v46 = vmax.f32 %v659_v6, %v1830_v42 }
 0x27e   : > { %v680_v33 = vrot.slane %v679_v8, 4  ;;  %v689_v34 = vrot.slane %v688_v15, 4  ;;  %v640_v37 = vrot.slane %v639_v31, 4  ;;  %v649_v0 = vrot.slane %v648_v32, 4 }
 0x27f   : > { %996 = vmatpush.msra.mxu1 %v736_v26  ;;  %937 = vmatpush.msra.mxu2 %v701_v29  ;;  %v669_v9 = vmax.f32 %v668_v1, %v1833_v43 }
 0x280   : > { %v681_v51 = vmax.f32 %v679_v8, %v680_v33  ;;  %v690_v5 = vmax.f32 %v688_v15, %v689_v34  ;;  %v641_v59 = vadd.f32 %v640_v37, %v639_v31  ;;  %v650_v60 = vadd.f32 %v649_v0, %v648_v32 }
 0x281   : > { %997 = vmatpush.msra.mxu1 %v734_v36  ;;  %938 = vmatpush.msra.mxu2 %v699_v38 }
 0x282   : > { %v682_v61 = vrot.slane %v681_v51, 2  ;;  %v691_v62 = vrot.slane %v690_v5, 2  ;;  %v642_v8 = vrot.slane %v641_v59, 2  ;;  %v651_v15 = vrot.slane %v650_v60, 2 }
 0x283   : > { %998 = vmatpush.msra.mxu1 %v732_v47 }
 0x284   : > { %v692_v16 = vmax.f32 %v690_v5, %v691_v62  ;;  %v643_v30 = vadd.f32 %v642_v8, %v641_v59  ;;  %v652_v31 = vadd.f32 %v651_v15, %v650_v60 }
 0x286   : > { %v693_v33 = vrot.slane %v692_v16, 1  ;;  %v644_v12 = vrot.slane %v643_v30, 1  ;;  %v653_v37 = vrot.slane %v652_v31, 1 }
 0x288   : > { %v694_v6 = vmax.f32 %v692_v16, %v693_v33 }
 0x28a   : > { %v561_v54 = vpop.permute.xlu1 %560 }
 0x28b   : > { %v1848_v10 = vmul.f32 %v561_v54, %v1715_v20  ;;  %v1851_v50 = vmul.f32 %v561_v54, %v1718_v21  ;;  %v683_v21 = vmax.f32 %v681_v51, %v682_v61 }
 0x28d   : > { %v621_v13 = vadd.f32 %v620_v52, %v1848_v10  ;;  %v630_v14 = vadd.f32 %v629_v53, %v1851_v50  ;;  %v661_v63 = vmax.f32 %v660_v46, %v1848_v10  ;;  %v670_v18 = vmax.f32 %v669_v9, %v1851_v50 }
 0x28e   : > { %v684_v32 = vrot.slane %v683_v21, 1  ;;  %v645_v46 = vadd.f32 %v644_v12, %v643_v30  ;;  %v654_v9 = vadd.f32 %v653_v37, %v652_v31 }
 0x28f   : > { %v622_v19 = vrot.slane %v621_v13, 4  ;;  %v631_v3 = vrot.slane %v630_v14, 4  ;;  %v662_v7 = vrot.slane %v661_v63, 4  ;;  %v671_v20 = vrot.slane %v670_v18, 4 }
 0x290   : > { %v685_v51 = vmax.f32 %v683_v21, %v684_v32  ;;  %v697_v61 = vmul.f32 0.03125, %v645_v46  ;;  %v698_v62 = vmul.f32 0.03125, %v654_v9 }
 0x291   : > { %v623_v17 = vadd.f32 %v622_v19, %v621_v13  ;;  %v632_v22 = vadd.f32 %v631_v3, %v630_v14  ;;  %v663_v23 = vmax.f32 %v661_v63, %v662_v7  ;;  %v672_v24 = vmax.f32 %v670_v18, %v671_v20 }
 0x293   : > { %v624_v25 = vrot.slane %v623_v17, 2  ;;  %v633_v44 = vrot.slane %v632_v22, 2  ;;  %v664_v26 = vrot.slane %v663_v23, 2  ;;  %v673_v29 = vrot.slane %v672_v24, 2 }
 0x295   : > { %v625_v34 = vadd.f32 %v624_v25, %v623_v17  ;;  %v634_v35 = vadd.f32 %v633_v44, %v632_v22  ;;  %v665_v36 = vmax.f32 %v663_v23, %v664_v26  ;;  %v674_v38 = vmax.f32 %v672_v24, %v673_v29 }
 0x297   : > { %v666_v39 = vrot.slane %v665_v36, 1  ;;  %v675_v45 = vrot.slane %v674_v38, 1  ;;  %v626_v47 = vrot.slane %v625_v34, 1  ;;  %v635_v11 = vrot.slane %v634_v35, 1 }
 0x299   : > { %v667_v0 = vmax.f32 %v665_v36, %v666_v39  ;;  %v676_v5 = vmax.f32 %v674_v38, %v675_v45  ;;  %v627_v53 = vadd.f32 %v626_v47, %v625_v34  ;;  %v636_v54 = vadd.f32 %v635_v11, %v634_v35 }
 0x29b   : > { %v831_v1 = vsel %vm395_vm4, %v685_v51, %v667_v0  ;;  %v832_v52 = vsel %vm395_vm4, %v694_v6, %v676_v5  ;;  %v695_v59 = vmul.f32 0.03125, %v627_v53  ;;  %v696_v60 = vmul.f32 0.03125, %v636_v54 }
 0x29c   : > { %851 = vmatmul.f32.vlgmr.msrb.gmra.mxu2 %v831_v1  ;;  %871 = vmatmul.f32.vlgmr.msrb.gmra.mxu3 %v832_v52 }
 0x29d   : > { %891 = vmatmul.f32.vlgmr.msrb.gmra.mxu0 %v831_v1  ;;  %911 = vmatmul.f32.vlgmr.msrb.gmra.mxu1 %v832_v52  ;;  %v919_v13 = vsel %vm395_vm4, %v697_v61, %v695_v59  ;;  %v920_v14 = vsel %vm395_vm4, %v698_v62, %v696_v60 }
 0x2a4   : > { %939 = vmatmul.f32.vlgmr.msra.gmra.mxu2 %v919_v13  ;;  %959 = vmatmul.f32.vlgmr.msra.gmra.mxu3 %v920_v14 }
 0x2a5   : > { %979 = vmatmul.f32.vlgmr.msra.gmra.mxu0 %v919_v13  ;;  %999 = vmatmul.f32.vlgmr.msra.gmra.mxu1 %v920_v14 }
 0x31a   : > { %v892_v63 = vpop.f32.mrf.mxu0  ;;  %v912_v18 = vpop.f32.mrf.mxu1 }
 0x31b   : > { %v913_v7 = vadd.f32 %v912_v18, %v892_v63 }
 0x31f   : > { %v852_v19 = vpop.f32.mrf.mxu2  ;;  %v872_v3 = vpop.f32.mrf.mxu3 }
 0x320   : > { %v873_v16 = vadd.f32 %v872_v3, %v852_v19 }
 0x322   : > { %v980_v20 = vpop.f32.mrf.mxu0  ;;  %v1000_v15 = vpop.f32.mrf.mxu1 }
 0x323   : > { %v981_v8 = vadd.f32 %v980_v20, %v913_v7 }
 0x325   : > { %v1001_v21 = vadd.f32 %v1000_v15, %v981_v8 }
 0x327   : > { %v1235_v17 = vmul.f32 -1.442695, %v1001_v21  ;;  %v940_v22 = vpop.f32.mrf.mxu2  ;;  %v960_v24 = vpop.f32.mrf.mxu3 }
 0x328   : > { %v941_v23 = vadd.f32 %v940_v22, %v873_v16 }
 0x329   : > { %1332 = vpow2.f32 %v1235_v17 }
 0x32a   : > { %v961_v25 = vadd.f32 %v960_v24, %v941_v23 }
 0x32c   : > { %v1234_v44 = vmul.f32 -1.442695, %v961_v25 }
 0x32e   : > { %1334 = vpow2.f32 %v1234_v44 }
 0x32f   : > { %v1333_v26 = vpop.eup %1332 }
 0x330   : > { %v1010_v29 = vadd.f32 1.0, %v1333_v26 }
 0x332   : > { %1336 = vrcp.f32 %v1010_v29  ;;  %v1037_v38 = vand.u32 2147483648, %v1010_v29  ;;  %v1035_v39 = vand.u32 2147483647, %v1010_v29  ;;  %vm1031_vm13 = vweird.f32 %v1010_v29 }
 0x334   : > { %v1335_v30 = vpop.eup %1334  ;;  %v1038_v37 = vor.u32 1.1754944e-38, %v1037_v38  ;;  %vm1036_vm15 = vcmp.eq.f32.partialorder %v1035_v39, 8.507059e+37 }
 0x335   : > { %v1009_v31 = vadd.f32 1.0, %v1335_v30 }
 0x337   : > { %1338 = vrcp.f32 %v1009_v31  ;;  %v1022_v0 = vand.u32 2147483648, %v1009_v31  ;;  %v1020_v5 = vand.u32 2147483647, %v1009_v31  ;;  %vm1016_vm1 = vweird.f32 %v1009_v31 }
 0x338   : > { %v1337_v32 = vpop.eup %1336 }
 0x339   : > { %v1027_v33 = vmul.f32 %v1337_v32, %v1010_v29  ;;  %vm1032_vm12 = vweird.f32 %v1337_v32  ;;  %v1023_v52 = vor.u32 1.1754944e-38, %v1022_v0  ;;  %vm1021_vm5 = vcmp.eq.f32.partialorder %v1020_v5, 8.507059e+37 }
 0x33a   : > { %vm1033_vm14 = vmor %vm1031_vm13, %vm1032_vm12 }
 0x33b   : > { %v1028_v34 = vsub.f32 1.0, %v1027_v33 }
 0x33d   : > { %v1339_v35 = vpop.eup %1338  ;;  %v1029_v36 = vmul.f32 %v1337_v32, %v1028_v34 }
 0x33e   : > { %v1012_v45 = vmul.f32 %v1339_v35, %v1009_v31  ;;  %vm1017_vm0 = vweird.f32 %v1339_v35 }
 0x33f   : > { %v1030_v47 = vadd.f32 %v1337_v32, %v1029_v36  ;;  %vm1018_vm2 = vmor %vm1016_vm1, %vm1017_vm0 }
 0x340   : > { %v1013_v11 = vsub.f32 1.0, %v1012_v45 }
 0x341   : > { %v1034_v12 = vsel %vm1033_vm14, %v1337_v32, %v1030_v47 }
 0x342   : > { %v1014_v51 = vmul.f32 %v1339_v35, %v1013_v11  ;;  %v1039_v6 = vsel %vm1036_vm15, %v1038_v37, %v1034_v12 }
 0x343   : > { %v1059_v53 = vrot.slane %v1039_v6, 7 }
 0x344   : > { %v1015_v1 = vadd.f32 %v1339_v35, %v1014_v51 }
 0x346   : > { %v1019_v54 = vsel %vm1018_vm2, %v1339_v35, %v1015_v1 }
 0x347   : > { %v1024_v46 = vsel %vm1021_vm5, %v1023_v52, %v1019_v54 }
 0x348   : > { %v1061_v9 = vsel %vm1060_vm3, %v1024_v46, %v1059_v53  ;;  %v1062_v59 = vsel %vm395_vm4, %v1024_v46, %v1059_v53 }
 0x349   : > { %v1063_v60 = vrot.slane %v1062_v59, 1  ;;  %v1064_v61 = vperm.slane %v1061_v9, 0  ;;  %v1065_v62 = vperm.slane %v1061_v9, 1 }
 0x34b   : > { %v1072_v13 = vmul.f32 %v1064_v61, %v1814_v27  ;;  %v1073_v14 = vmul.f32 %v1065_v62, %v1817_v28  ;;  %v1074_v63 = vmul.f32 %v1064_v61, %v1823_v2  ;;  %v1075_v18 = vmul.f32 %v1065_v62, %v1827_v4 }
 0x34c   : > { %v1066_v19 = vperm.slane %v1063_v60, 0  ;;  %v1076_v3 = vmul.f32 %v1064_v61, %v1830_v42  ;;  %v1067_v27 = vperm.slane %v1063_v60, 1  ;;  %v1077_v28 = vmul.f32 %v1065_v62, %v1833_v43 }
 0x34d   : > { %1088 = vst [vmem:[%s1869_s7] sm:$0xff] %v1072_v13  ;;  %v1078_v2 = vmul.f32 %v1064_v61, %v1848_v10  ;;  %v1079_v4 = vmul.f32 %v1065_v62, %v1851_v50 }
 0x34e   : > { %1089 = vst [vmem:[%s1869_s7 + $0x8] sm:$0xff] %v1073_v14  ;;  %v1080_v42 = vmul.f32 %v1066_v19, %v1776_v40  ;;  %v1081_v7 = vmul.f32 %v1067_v27, %v1779_v41  ;;  %v1082_v43 = vmul.f32 %v1066_v19, %v1782_v48  ;;  %v1083_v10 = vmul.f32 %v1067_v27, %v1785_v49 }
 0x34f   : > { %1090 = vst [vmem:[%s1869_s7 + $0x10] sm:$0xff] %v1074_v63  ;;  %v1084_v40 = vmul.f32 %v1066_v19, %v1792_v55  ;;  %v1085_v41 = vmul.f32 %v1067_v27, %v1795_v56  ;;  %v1086_v48 = vmul.f32 %v1066_v19, %v1798_v57  ;;  %v1087_v50 = vmul.f32 %v1067_v27, %v1801_v58 }
 0x350   : > { %1091 = vst [vmem:[%s1869_s7 + $0x18] sm:$0xff] %v1075_v18 }
 0x351   : > { %1092 = vst [vmem:[%s1869_s7 + $0x20] sm:$0xff] %v1076_v3 }
 0x352   : > { %1093 = vst [vmem:[%s1869_s7 + $0x28] sm:$0xff] %v1077_v28 }
 0x353   : > { %1094 = vst [vmem:[%s1869_s7 + $0x30] sm:$0xff] %v1078_v2 }
 0x354   : > { %1095 = vst [vmem:[%s1869_s7 + $0x38] sm:$0xff] %v1079_v4 }
 0x355   : > { %1096 = vst [vmem:[%s1869_s7 + $0x40] sm:$0xff] %v1080_v42 }
 0x356   : > { %1097 = vst [vmem:[%s1869_s7 + $0x48] sm:$0xff] %v1081_v7 }
 0x357   : > { %1098 = vst [vmem:[%s1869_s7 + $0x50] sm:$0xff] %v1082_v43 }
 0x358   : > { %1099 = vst [vmem:[%s1869_s7 + $0x58] sm:$0xff] %v1083_v10 }
 0x359   : > { %1100 = vst [vmem:[%s1869_s7 + $0x60] sm:$0xff] %v1084_v40 }
 0x35a   : > { %1101 = vst [vmem:[%s1869_s7 + $0x68] sm:$0xff] %v1085_v41 }
 0x35b   : > { %1102 = vst [vmem:[%s1869_s7 + $0x70] sm:$0xff] %v1086_v48 }
 0x35c   : > { %1103 = vst [vmem:[%s1869_s7 + $0x78] sm:$0xff] %v1087_v50 }
 0x35d   : > { %1457 = shalt.err (!%p1454_p10)
}
 0x35e   : > { %s1507_s8 = smov 256   ;;  %s1508_s6 = smov 16  }
 0x35f   : > { %1256 = dma.vmem_to_hbm [thread:$0]  (%p1611_p3), %s1119_s22, 2048, %s1121_s24, %s1105_s29, %s1507_s8, %s1507_s8, %s1508_s6  }
 0x360 PF: > { %s1135_s7 = sand.u32 1, %s1488_s18   ;;  %p1945_p12 = scmp.ge.s32.totalorder %s1500_s21, 2 }
 0x361   : > { %s1136_s26 = scalar_lea.sflag [#allocation4], %s1135_s7 }
 0x362   : > { %p1270_p13 = pnand %p1945_p12, %p1574_p6 }
 0x364   : > { %p1271_p0 = pneg %p1270_p13 }
 0x366   : > { %1483 = dma.done.wait (%p1271_p0), %s1136_s26, 2048  }
 0x367   : > { %1485 = vsyncadd (%p1271_p0), %s1136_s26, 4294965248  ;;  %p19_p5 = scmp.ge.s32.totalorder %s1601_s14, 4   ;;  %s1946_s18 = smov %s1492_s19 }
 0x368   : > { %s1947_s19 = smov %s1496_s20  ;;  %s1948_s20 = smov %s1617_s23 }
 0x369   : > { %s1949_s21 = smov %s1601_s14  ;;  %21 = sbr.rel (!%p19_p5) target bundleno = 6 (0x6), region = 93 }
 0x36e   :  { %1142 = vsyncpa [#allocation3], 1 }
 0x36f   :  { %1144 = vsyncpa [#allocation3 + $0x1], 1 }
 0x370   :  { %1145 = vsyncpa [#allocation6], 1 }
 0x371   :  { %1146 = vsyncpa [#allocation4], 1 }
 0x372   :  { %1148 = vsyncpa [#allocation4 + $0x1], 1 }

</bundles_post_ra>
